<compile_context>
chip_gen: v5e
topology: v5e:2x2
jax: 0.10.0
libtpu: 0.0.40
codegen_flags: <defaults>
</compile_context>

<pallas_src>
import functools

import jax
import jax.numpy as jnp
from jax.experimental import pallas as pl
from jax.experimental.pallas import tpu as pltpu


# ---------------------------------------------------------------------------
# Parameter init (deterministic, matches shapes of the PyTorch module).
# layers = [in_dim, n_hidden_layers, hidden_width, out_dim]
#   linears = [Linear(in, H)] + [Linear(H, H)]*(n_hidden-1) + [Linear(H, out)]
# Xavier-normal weights (gain=1.0), zero biases.
# Weights are stored as (in, out) so the kernel computes x @ W (== x @ W_pt.T).
# ---------------------------------------------------------------------------
def init_params(key, layers):
    in_dim, n_hidden, hidden, out_dim = layers
    dims = [in_dim] + [hidden] * n_hidden + [out_dim]
    params = []
    for i in range(len(dims) - 1):
        fan_in, fan_out = dims[i], dims[i + 1]
        key, sub = jax.random.split(key)
        std = (2.0 / (fan_in + fan_out)) ** 0.5
        w = std * jax.random.normal(sub, (fan_in, fan_out), dtype=jnp.float32)
        b = jnp.zeros((1, fan_out), dtype=jnp.float32)
        params.append((w, b))
    return params


# ---------------------------------------------------------------------------
# Pallas kernel: full (folded) MLP forward on one batch-row tile.
# refs: x_ref (tm, F), y_ref (tm, F),
#       w0x (F, F*H), w0y (F, F*H), b0 (1, F*H),
#       (w_i, b_i) for the remaining layers (block-diagonal / tiled),
#       o_ref (tm, F*out).
# ---------------------------------------------------------------------------
def mlp_kernel(*refs, n_layers):
    x_ref, y_ref = refs[0], refs[1]
    o_ref = refs[-1]
    w0x, w0y, b0 = refs[2], refs[3], refs[4]
    wb = refs[5:-1]

    # Layer 0: no concatenated input needed — two shallow dots + bias + tanh.
    h = jnp.tanh(
        jnp.dot(x_ref[...], w0x[...], preferred_element_type=jnp.float32)
        + jnp.dot(y_ref[...], w0y[...], preferred_element_type=jnp.float32)
        + b0[...]
    )

    # Remaining layers: lane-dense folded matmuls on the MXU.
    for i in range(n_layers - 1):
        w = wb[2 * i][...]
        b = wb[2 * i + 1][...]
        z = jnp.dot(h, w, preferred_element_type=jnp.float32) + b
        h = jnp.tanh(z) if i < n_layers - 2 else z

    o_ref[...] = h.astype(o_ref.dtype)


def _round_up(v, m):
    return -(-v // m) * m


def pinn_forward(x, y, params, *, fold=4, tm=1024):
    """x, y: (N, 1) float32.  Returns (N, out_dim) = [u, v, p].

    fold: how many batch samples are folded into the lane dimension
          (4 suits all TPU generations; 8 matches the 256-wide MXU on v6e/v7x).
    tm:   folded-row tile (each grid step processes tm*fold samples).
    """
    N = x.shape[0]
    w0, b0 = params[0]
    assert w0.shape[0] == 2, "first layer must take (x, y)"
    H = w0.shape[1]
    out_dim = params[-1][0].shape[1]
    n_layers = len(params)

    # ----- batch folding + padding (handles arbitrary N) -------------------
    n_fold = -(-N // fold)                       # folded rows needed
    if n_fold > 8:
        # Keep at least 2 grid steps when there is enough work so the
        # "parallel" axis can shard across v7x's two TensorCores.
        tm = min(tm, _round_up(-(-n_fold // 2), 8))
    else:
        tm = _round_up(max(n_fold, 1), 8)
    n_fold_pad = _round_up(n_fold, tm)
    pad_rows = n_fold_pad * fold - N

    x_f = jnp.pad(x, ((0, pad_rows), (0, 0))).reshape(n_fold_pad, fold)
    y_f = jnp.pad(y, ((0, pad_rows), (0, 0))).reshape(n_fold_pad, fold)

    # ----- folded (block-diagonal) weights ----------------------------------
    eye = jnp.eye(fold, dtype=jnp.float32)
    w0x = jnp.kron(eye, w0[0:1, :])              # (fold, fold*H)
    w0y = jnp.kron(eye, w0[1:2, :])              # (fold, fold*H)
    b0f = jnp.tile(b0, (1, fold))                # (1, fold*H)
    folded = [(jnp.kron(eye, w), jnp.tile(b, (1, fold))) for (w, b) in params[1:]]

    # ----- specs -------------------------------------------------------------
    in_specs = [
        pl.BlockSpec((tm, fold), lambda i: (i, 0)),       # x tile
        pl.BlockSpec((tm, fold), lambda i: (i, 0)),       # y tile
        pl.BlockSpec(w0x.shape, lambda i: (0, 0)),
        pl.BlockSpec(w0y.shape, lambda i: (0, 0)),
        pl.BlockSpec(b0f.shape, lambda i: (0, 0)),
    ]
    args = [x_f, y_f, w0x, w0y, b0f]
    for (wf, bf) in folded:
        in_specs.append(pl.BlockSpec(wf.shape, lambda i: (0, 0)))
        in_specs.append(pl.BlockSpec(bf.shape, lambda i: (0, 0)))
        args.extend([wf, bf])

    out_spec = pl.BlockSpec((tm, fold * out_dim), lambda i: (i, 0))

    # Advisory cost hint (logical, un-folded flops).
    flops = 2 * N * (2 * H + (n_layers - 2) * H * H + H * out_dim)
    transcendentals = N * H * (n_layers - 1)
    bytes_accessed = 4 * (2 * N + N * out_dim
                          + sum(w.size + b.size for (w, b) in params))
    cost = pl.CostEstimate(flops=flops, transcendentals=transcendentals,
                           bytes_accessed=bytes_accessed)

    kernel = functools.partial(mlp_kernel, n_layers=n_layers)
    out_f = pl.pallas_call(
        kernel,
        out_shape=jax.ShapeDtypeStruct((n_fold_pad, fold * out_dim), jnp.float32),
        grid_spec=pltpu.PrefetchScalarGridSpec(
            num_scalar_prefetch=0,
            grid=(n_fold_pad // tm,),
            in_specs=in_specs,
            out_specs=out_spec,
        ),
        compiler_params=pltpu.CompilerParams(
            dimension_semantics=("parallel",)),
        cost_estimate=cost,
    )(*args)

    # Row-major un-fold + drop padding rows.
    return out_f.reshape(n_fold_pad * fold, out_dim)[:N]


# Pure-JAX reference for correctness checking.
def pinn_forward_ref(x, y, params):
    a = jnp.concatenate([x, y], axis=1)
    for i, (w, b) in enumerate(params):
        z = a @ w + b
        a = jnp.tanh(z) if i < len(params) - 1 else z
    return a


if __name__ == "__main__":
    # layers = [in_dim=2, n_hidden=3, hidden=32, out_dim=3]  (u, v, p)
    layers = [2, 3, 32, 3]
    key = jax.random.PRNGKey(0)
    kp, kx, ky = jax.random.split(key, 3)

    params = init_params(kp, layers)

    N = 1000  # collocation points (not a multiple of fold*tm -> exercises padding)
    x = jax.random.uniform(kx, (N, 1), dtype=jnp.float32)
    y = jax.random.uniform(ky, (N, 1), dtype=jnp.float32)

    out = pinn_forward(x, y, params, fold=4, tm=1024)
    out = jax.block_until_ready(out)

    ref = pinn_forward_ref(x, y, params)
    assert out.shape == (N, layers[3])
    assert jnp.allclose(out, ref, atol=1e-5, rtol=1e-5), "mismatch vs reference"

    print("KERNEL_OK")
</pallas_src>

<mosaic_0001>
module attributes {stable_mosaic.version = 11 : i64} {
  func.func @mlp_kernel(%arg0: i32, %arg1: memref<128x4xf32, #tpu.memory_space<vmem>>, %arg2: memref<128x4xf32, #tpu.memory_space<vmem>>, %arg3: memref<4x128xf32, #tpu.memory_space<vmem>>, %arg4: memref<4x128xf32, #tpu.memory_space<vmem>>, %arg5: memref<1x128xf32, #tpu.memory_space<vmem>>, %arg6: memref<128x128xf32, #tpu.memory_space<vmem>>, %arg7: memref<1x128xf32, #tpu.memory_space<vmem>>, %arg8: memref<128x128xf32, #tpu.memory_space<vmem>>, %arg9: memref<1x128xf32, #tpu.memory_space<vmem>>, %arg10: memref<128x12xf32, #tpu.memory_space<vmem>>, %arg11: memref<1x12xf32, #tpu.memory_space<vmem>>, %arg12: memref<128x12xf32, #tpu.memory_space<vmem>>) attributes {dimension_semantics = [#tpu.dimension_semantics<parallel>], iteration_bounds = array<i64: 2>, scalar_prefetch = 0 : i64, scratch_operands = 0 : i64, tpu.core_type = #tpu.core_type<tc>, window_params = [{transform_indices = @transform_0, window_bounds = array<i64: 128, 4>}, {transform_indices = @transform_1, window_bounds = array<i64: 128, 4>}, {pipeline_mode = #tpu.pipeline_mode<synchronous>, transform_indices = @transform_2, window_bounds = array<i64: 4, 128>}, {pipeline_mode = #tpu.pipeline_mode<synchronous>, transform_indices = @transform_3, window_bounds = array<i64: 4, 128>}, {pipeline_mode = #tpu.pipeline_mode<synchronous>, transform_indices = @transform_4, window_bounds = array<i64: 1, 128>}, {pipeline_mode = #tpu.pipeline_mode<synchronous>, transform_indices = @transform_5, window_bounds = array<i64: 128, 128>}, {pipeline_mode = #tpu.pipeline_mode<synchronous>, transform_indices = @transform_6, window_bounds = array<i64: 1, 128>}, {pipeline_mode = #tpu.pipeline_mode<synchronous>, transform_indices = @transform_7, window_bounds = array<i64: 128, 128>}, {pipeline_mode = #tpu.pipeline_mode<synchronous>, transform_indices = @transform_8, window_bounds = array<i64: 1, 128>}, {pipeline_mode = #tpu.pipeline_mode<synchronous>, transform_indices = @transform_9, window_bounds = array<i64: 128, 12>}, {pipeline_mode = #tpu.pipeline_mode<synchronous>, transform_indices = @transform_10, window_bounds = array<i64: 1, 12>}, {transform_indices = @transform_11, window_bounds = array<i64: 128, 12>}]} {
    %c0 = arith.constant 0 : index
    %c0_0 = arith.constant 0 : index
    %0 = vector.load %arg1[%c0, %c0_0] : memref<128x4xf32, #tpu.memory_space<vmem>>, vector<128x4xf32>
    %c0_1 = arith.constant 0 : index
    %c0_2 = arith.constant 0 : index
    %1 = vector.load %arg3[%c0_1, %c0_2] : memref<4x128xf32, #tpu.memory_space<vmem>>, vector<4x128xf32>
    %cst = arith.constant dense<0.000000e+00> : vector<128x128xf32>
    %2 = tpu.matmul %0, %1, %cst {dimension_numbers = #tpu.dot_dimension_numbers<[1], [0], [0], [1], [0, 0, 1, 1], [], []>} : vector<128x4xf32>, vector<4x128xf32>, vector<128x128xf32> -> vector<128x128xf32>
    %c0_3 = arith.constant 0 : index
    %c0_4 = arith.constant 0 : index
    %3 = vector.load %arg2[%c0_3, %c0_4] : memref<128x4xf32, #tpu.memory_space<vmem>>, vector<128x4xf32>
    %c0_5 = arith.constant 0 : index
    %c0_6 = arith.constant 0 : index
    %4 = vector.load %arg4[%c0_5, %c0_6] : memref<4x128xf32, #tpu.memory_space<vmem>>, vector<4x128xf32>
    %cst_7 = arith.constant dense<0.000000e+00> : vector<128x128xf32>
    %5 = tpu.matmul %3, %4, %cst_7 {dimension_numbers = #tpu.dot_dimension_numbers<[1], [0], [0], [1], [0, 0, 1, 1], [], []>} : vector<128x4xf32>, vector<4x128xf32>, vector<128x128xf32> -> vector<128x128xf32>
    %6 = arith.addf %2, %5 : vector<128x128xf32>
    %c0_8 = arith.constant 0 : index
    %c0_9 = arith.constant 0 : index
    %7 = vector.load %arg5[%c0_8, %c0_9] : memref<1x128xf32, #tpu.memory_space<vmem>>, vector<1x128xf32>
    %8 = vector.broadcast %7 : vector<1x128xf32> to vector<128x128xf32>
    %9 = arith.addf %6, %8 : vector<128x128xf32>
    %10 = math.tanh %9 : vector<128x128xf32>
    %c0_10 = arith.constant 0 : index
    %c0_11 = arith.constant 0 : index
    %11 = vector.load %arg6[%c0_10, %c0_11] : memref<128x128xf32, #tpu.memory_space<vmem>>, vector<128x128xf32>
    %c0_12 = arith.constant 0 : index
    %c0_13 = arith.constant 0 : index
    %12 = vector.load %arg7[%c0_12, %c0_13] : memref<1x128xf32, #tpu.memory_space<vmem>>, vector<1x128xf32>
    %cst_14 = arith.constant dense<0.000000e+00> : vector<128x128xf32>
    %13 = tpu.matmul %10, %11, %cst_14 {dimension_numbers = #tpu.dot_dimension_numbers<[1], [0], [0], [1], [0, 0, 1, 1], [], []>} : vector<128x128xf32>, vector<128x128xf32>, vector<128x128xf32> -> vector<128x128xf32>
    %14 = vector.broadcast %12 : vector<1x128xf32> to vector<128x128xf32>
    %15 = arith.addf %13, %14 : vector<128x128xf32>
    %16 = math.tanh %15 : vector<128x128xf32>
    %c0_15 = arith.constant 0 : index
    %c0_16 = arith.constant 0 : index
    %17 = vector.load %arg8[%c0_15, %c0_16] : memref<128x128xf32, #tpu.memory_space<vmem>>, vector<128x128xf32>
    %c0_17 = arith.constant 0 : index
    %c0_18 = arith.constant 0 : index
    %18 = vector.load %arg9[%c0_17, %c0_18] : memref<1x128xf32, #tpu.memory_space<vmem>>, vector<1x128xf32>
    %cst_19 = arith.constant dense<0.000000e+00> : vector<128x128xf32>
    %19 = tpu.matmul %16, %17, %cst_19 {dimension_numbers = #tpu.dot_dimension_numbers<[1], [0], [0], [1], [0, 0, 1, 1], [], []>} : vector<128x128xf32>, vector<128x128xf32>, vector<128x128xf32> -> vector<128x128xf32>
    %20 = vector.broadcast %18 : vector<1x128xf32> to vector<128x128xf32>
    %21 = arith.addf %19, %20 : vector<128x128xf32>
    %22 = math.tanh %21 : vector<128x128xf32>
    %c0_20 = arith.constant 0 : index
    %c0_21 = arith.constant 0 : index
    %23 = vector.load %arg10[%c0_20, %c0_21] : memref<128x12xf32, #tpu.memory_space<vmem>>, vector<128x12xf32>
    %c0_22 = arith.constant 0 : index
    %c0_23 = arith.constant 0 : index
    %24 = vector.load %arg11[%c0_22, %c0_23] : memref<1x12xf32, #tpu.memory_space<vmem>>, vector<1x12xf32>
    %cst_24 = arith.constant dense<0.000000e+00> : vector<128x12xf32>
    %25 = tpu.matmul %22, %23, %cst_24 {dimension_numbers = #tpu.dot_dimension_numbers<[1], [0], [0], [1], [0, 0, 1, 1], [], []>} : vector<128x128xf32>, vector<128x12xf32>, vector<128x12xf32> -> vector<128x12xf32>
    %26 = vector.broadcast %24 : vector<1x12xf32> to vector<128x12xf32>
    %27 = arith.addf %25, %26 : vector<128x12xf32>
    %c0_25 = arith.constant 0 : index
    %c0_26 = arith.constant 0 : index
    %28 = vector.load %arg12[%c0_25, %c0_26] : memref<128x12xf32, #tpu.memory_space<vmem>>, vector<128x12xf32>
    tpu.vector_store %arg12[%c0_25, %c0_26], %27 {strides = array<i32>} : memref<128x12xf32, #tpu.memory_space<vmem>>, vector<128x12xf32>,
    return
  }
  func.func @transform_0(%arg0: i32) -> (i32, i32) {
    %c0_i32 = arith.constant 0 : i32
    %c0_i32_0 = arith.constant 0 : i32
    return %arg0, %c0_i32 : i32, i32
  }
  func.func @transform_1(%arg0: i32) -> (i32, i32) {
    %c0_i32 = arith.constant 0 : i32
    %c0_i32_0 = arith.constant 0 : i32
    return %arg0, %c0_i32 : i32, i32
  }
  func.func @transform_2(%arg0: i32) -> (i32, i32) {
    %c0_i32 = arith.constant 0 : i32
    %c0_i32_0 = arith.constant 0 : i32
    %c0_i32_1 = arith.constant 0 : i32
    return %c0_i32, %c0_i32_0 : i32, i32
  }
  func.func @transform_3(%arg0: i32) -> (i32, i32) {
    %c0_i32 = arith.constant 0 : i32
    %c0_i32_0 = arith.constant 0 : i32
    %c0_i32_1 = arith.constant 0 : i32
    return %c0_i32, %c0_i32_0 : i32, i32
  }
  func.func @transform_4(%arg0: i32) -> (i32, i32) {
    %c0_i32 = arith.constant 0 : i32
    %c0_i32_0 = arith.constant 0 : i32
    %c0_i32_1 = arith.constant 0 : i32
    return %c0_i32, %c0_i32_0 : i32, i32
  }
  func.func @transform_5(%arg0: i32) -> (i32, i32) {
    %c0_i32 = arith.constant 0 : i32
    %c0_i32_0 = arith.constant 0 : i32
    %c0_i32_1 = arith.constant 0 : i32
    return %c0_i32, %c0_i32_0 : i32, i32
  }
  func.func @transform_6(%arg0: i32) -> (i32, i32) {
    %c0_i32 = arith.constant 0 : i32
    %c0_i32_0 = arith.constant 0 : i32
    %c0_i32_1 = arith.constant 0 : i32
    return %c0_i32, %c0_i32_0 : i32, i32
  }
  func.func @transform_7(%arg0: i32) -> (i32, i32) {
    %c0_i32 = arith.constant 0 : i32
    %c0_i32_0 = arith.constant 0 : i32
    %c0_i32_1 = arith.constant 0 : i32
    return %c0_i32, %c0_i32_0 : i32, i32
  }
  func.func @transform_8(%arg0: i32) -> (i32, i32) {
    %c0_i32 = arith.constant 0 : i32
    %c0_i32_0 = arith.constant 0 : i32
    %c0_i32_1 = arith.constant 0 : i32
    return %c0_i32, %c0_i32_0 : i32, i32
  }
  func.func @transform_9(%arg0: i32) -> (i32, i32) {
    %c0_i32 = arith.constant 0 : i32
    %c0_i32_0 = arith.constant 0 : i32
    %c0_i32_1 = arith.constant 0 : i32
    return %c0_i32, %c0_i32_0 : i32, i32
  }
  func.func @transform_10(%arg0: i32) -> (i32, i32) {
    %c0_i32 = arith.constant 0 : i32
    %c0_i32_0 = arith.constant 0 : i32
    %c0_i32_1 = arith.constant 0 : i32
    return %c0_i32, %c0_i32_0 : i32, i32
  }
  func.func @transform_11(%arg0: i32) -> (i32, i32) {
    %c0_i32 = arith.constant 0 : i32
    %c0_i32_0 = arith.constant 0 : i32
    return %arg0, %c0_i32 : i32, i32
  }
}

</mosaic_0001>

<bundles_post_ra>
// kernel: tpu_custom_call.1
= control target key start
LH: loop header
LB: loop body
LE: loop exit
PB: predicated region body
PF: predicated region fallthrough
CT: control target
= control target key end

     0   :  { %s1314_s17 = smov 0   ;;  %s1657_s0 = inlined_call_operand.vmem [shape: f32[256,4], index: 0, kind: input, shape index: {}]   ;;  %s1658_s1 = inlined_call_operand.vmem [shape: f32[256,4], index: 1, kind: input, shape index: {}]   ;;  %s1659_s2 = inlined_call_operand.vmem [shape: f32[4,128], index: 2, kind: input, shape index: {}]   ;;  %s1660_s3 = inlined_call_operand.vmem [shape: f32[4,128], index: 3, kind: input, shape index: {}]   ;;  %s1661_s4 = inlined_call_operand.vmem [shape: f32[1,128], index: 4, kind: input, shape index: {}]   ;;  %s1662_s5 = inlined_call_operand.vmem [shape: f32[128,128], index: 5, kind: input, shape index: {}]   ;;  %s1663_s6 = inlined_call_operand.vmem [shape: f32[1,128], index: 6, kind: input, shape index: {}]   ;;  %s1664_s7 = inlined_call_operand.vmem [shape: f32[128,128], index: 7, kind: input, shape index: {}]   ;;  %s1665_s8 = inlined_call_operand.vmem [shape: f32[1,128], index: 8, kind: input, shape index: {}]   ;;  %s1666_s9 = inlined_call_operand.vmem [shape: f32[128,12], index: 9, kind: input, shape index: {}]   ;;  %s1667_s10 = inlined_call_operand.vmem [shape: f32[1,12], index: 10, kind: input, shape index: {}]   ;;  %s1668_s11 = inlined_call_operand.vmem [shape: f32[256,12], index: 11, kind: output, shape index: {}]  }
   0x1 LB: > { %s1088_s18 = sadd.s32 4294967295, %s1252_s17   ;;  %p1092_p0 = scmp.ge.s32.totalorder %s1252_s17, 1  ;;  %s1252_s17 = sphi %s1314_s17, %s21_s17  }
   0x2   : > { %p349_p1 = scmp.lt.s32.totalorder %s1252_s17, 3 }
   0x4   : > { %p350_p2 = pnand %p1092_p0, %p349_p1 }
   0x5   : > { %s1093_s21 = sshll.u32 (!%p350_p2), %s1088_s18, 4 }
   0x6   : > { %353 = sbr.rel (%p350_p2) target bundleno = 723 (0x2d3), region = 64  ;;  %p395_p3 = scmp.lt.s32.totalorder (!%p350_p2), %s1093_s21, 31 }
   0xb   : > { %v445_v0 = vld [vmem:[%s1660_s3] sm:$0xf]  ;;  %vm495_vm0 = vcmask 1043456   ;;  %s1670_s21 = smov (!%p395_p3, %s1093_s21), 31  ;;  %vm446_vm1 = vcmask 31744   ;;  %v731_v24 = vld [vmem:[%s1662_s5 + $0x78] sm:$0xff] }
   0xc   : > { %1135 = vmatpush.msk.msra.mxu1 %vm495_vm0, %v445_v0  ;;  %v428_v1 = vld [vmem:[%s1659_s2] sm:$0xf]  ;;  %1099 = vmatpush.msk.msra.mxu0 %vm495_vm0, %v445_v0  ;;  %s1328_s24 = sshll.u32 %s1670_s21, 3  ;;  %v730_v26 = vld [vmem:[%s1662_s5 + $0x70] sm:$0xff]  ;;  %v729_v28 = vld [vmem:[%s1662_s5 + $0x68] sm:$0xff]  ;;  %vm1003_vm2 = vcmask 97280  }
   0xd   : > { %1136 = vmatpush.msk.msra.mxu2 %vm495_vm0, %v445_v0  ;;  %1137 = vmatpush.msk.msra.mxu3 %vm495_vm0, %v445_v0  ;;  %s1334_s27 = scalar_lea.vmem %s1658_s1, %s1328_s24  ;;  %s1358_s30 = scalar_lea.vmem %s1657_s0, %s1328_s24  ;;  %v728_v29 = vld [vmem:[%s1662_s5 + $0x60] sm:$0xff]  ;;  %v727_v31 = vld [vmem:[%s1662_s5 + $0x58] sm:$0xff]  ;;  %v726_v33 = vld [vmem:[%s1662_s5 + $0x50] sm:$0xff] }
   0xe   : > { %1116 = vmatpush.msk.msrb.mxu1 %vm495_vm0, %v428_v1  ;;  %v433_v2 = vld [vmem:[%s1334_s27 + $0x20] sm:$0xff]  ;;  %v434_v4 = vld [vmem:[%s1334_s27 + $0x28] sm:$0xff]  ;;  %v435_v6 = vld [vmem:[%s1334_s27 + $0x30] sm:$0xff]  ;;  %s1620_s18 = scalar_lea.vmem %s1668_s11, %s1328_s24 }
   0xf   : > { %1104 = vmatmul.msk.f32.vlgmr.msra.gmra.mxu1 %vm446_vm1, %v433_v2  ;;  %v429_v3 = vld [vmem:[%s1334_s27] sm:$0xff]  ;;  %v430_v5 = vld [vmem:[%s1334_s27 + $0x8] sm:$0xff]  ;;  %v431_v7 = vld [vmem:[%s1334_s27 + $0x10] sm:$0xff]  ;;  %736 = vmatpush.msrb.mxu2 %v731_v24 }
  0x10   : > { %1100 = vmatmul.msk.f32.vlgmr.msra.gmra.mxu0 %vm446_vm1, %v429_v3  ;;  %v436_v8 = vld [vmem:[%s1334_s27 + $0x38] sm:$0xff]  ;;  %v437_v10 = vld [vmem:[%s1334_s27 + $0x40] sm:$0xff]  ;;  %v413_v12 = vld [vmem:[%s1358_s30 + $0x8] sm:$0xff] }
  0x11   : > { %v432_v9 = vld [vmem:[%s1334_s27 + $0x18] sm:$0xff]  ;;  %v412_v11 = vld [vmem:[%s1358_s30] sm:$0xff]  ;;  %v414_v13 = vld [vmem:[%s1358_s30 + $0x10] sm:$0xff]  ;;  %737 = vmatpush.msrb.mxu2 %v730_v26 }
  0x12   : > { %v415_v14 = vld [vmem:[%s1358_s30 + $0x18] sm:$0xff]  ;;  %v416_v15 = vld [vmem:[%s1358_s30 + $0x20] sm:$0xff]  ;;  %v438_v16 = vld [vmem:[%s1334_s27 + $0x48] sm:$0xff] }
  0x13   : > { %1109 = vmatmul.msk.f32.vlgmr.msra.gmra.mxu2 %vm446_vm1, %v438_v16  ;;  %v417_v17 = vld [vmem:[%s1358_s30 + $0x28] sm:$0xff]  ;;  %v439_v18 = vld [vmem:[%s1334_s27 + $0x50] sm:$0xff]  ;;  %v440_v20 = vld [vmem:[%s1334_s27 + $0x58] sm:$0xff] }
  0x14   : > { %v418_v19 = vld [vmem:[%s1358_s30 + $0x30] sm:$0xff]  ;;  %v419_v21 = vld [vmem:[%s1358_s30 + $0x38] sm:$0xff]  ;;  %v441_v22 = vld [vmem:[%s1334_s27 + $0x60] sm:$0xff]  ;;  %738 = vmatpush.msrb.mxu2 %v729_v28 }
  0x15   : > { %v420_v23 = vld [vmem:[%s1358_s30 + $0x40] sm:$0xff]  ;;  %v442_v25 = vld [vmem:[%s1334_s27 + $0x68] sm:$0xff]  ;;  %v443_v30 = vld [vmem:[%s1334_s27 + $0x70] sm:$0xff] }
  0x16   : > { %v421_v27 = vld [vmem:[%s1358_s30 + $0x48] sm:$0xff]  ;;  %739 = vmatpush.msrb.mxu2 %v728_v29  ;;  %1114 = vmatmul.msk.f32.vlgmr.msra.gmra.mxu3 %vm446_vm1, %v443_v30  ;;  %v422_v32 = vld [vmem:[%s1358_s30 + $0x50] sm:$0xff]  ;;  %v444_v35 = vld [vmem:[%s1334_s27 + $0x78] sm:$0xff] }
  0x17   : > { %1105 = vmatmul.msk.f32.gmra.mxu1 %vm446_vm1, %v434_v4  ;;  %v725_v34 = vld [vmem:[%s1662_s5 + $0x48] sm:$0xff]  ;;  %v724_v36 = vld [vmem:[%s1662_s5 + $0x40] sm:$0xff]  ;;  %v423_v38 = vld [vmem:[%s1358_s30 + $0x58] sm:$0xff] }
  0x18   : > { %1101 = vmatmul.msk.f32.gmra.mxu0 %vm446_vm1, %v430_v5  ;;  %740 = vmatpush.msrb.mxu2 %v727_v31  ;;  %v723_v39 = vld [vmem:[%s1662_s5 + $0x38] sm:$0xff]  ;;  %v722_v40 = vld [vmem:[%s1662_s5 + $0x30] sm:$0xff]  ;;  %v721_v41 = vld [vmem:[%s1662_s5 + $0x28] sm:$0xff] }
  0x19   : > { %v424_v43 = vld [vmem:[%s1358_s30 + $0x60] sm:$0xff]  ;;  %v719_v45 = vld [vmem:[%s1662_s5 + $0x18] sm:$0xff]  ;;  %v718_v46 = vld [vmem:[%s1662_s5 + $0x10] sm:$0xff] }
  0x1a   : > { %741 = vmatpush.msrb.mxu2 %v726_v33  ;;  %v720_v44 = vld [vmem:[%s1662_s5 + $0x20] sm:$0xff]  ;;  %v717_v47 = vld [vmem:[%s1662_s5 + $0x8] sm:$0xff]  ;;  %v426_v52 = vld [vmem:[%s1358_s30 + $0x70] sm:$0xff] }
  0x1b   : > { %1110 = vmatmul.msk.f32.gmra.mxu2 %vm446_vm1, %v439_v18  ;;  %v425_v49 = vld [vmem:[%s1358_s30 + $0x68] sm:$0xff]  ;;  %v716_v50 = vld [vmem:[%s1662_s5] sm:$0xff]  ;;  %v427_v54 = vld [vmem:[%s1358_s30 + $0x78] sm:$0xff] }
  0x1c   : > { %742 = vmatpush.msrb.mxu2 %v725_v34  ;;  %v1457_v56 = vld [vmem:[%s1661_s4] ss:$0 sm:$0xff] }
  0x1e   : > { %1115 = vmatmul.msk.f32.gmra.mxu3 %vm446_vm1, %v444_v35  ;;  %743 = vmatpush.msrb.mxu2 %v724_v36 }
  0x1f   : > { %1106 = vmatmul.msk.f32.gmra.mxu1 %vm446_vm1, %v435_v6 }
  0x20   : > { %1102 = vmatmul.msk.f32.gmra.mxu0 %vm446_vm1, %v431_v7  ;;  %744 = vmatpush.msrb.mxu2 %v723_v39 }
  0x22   : > { %745 = vmatpush.msrb.mxu2 %v722_v40 }
  0x23   : > { %1111 = vmatmul.msk.f32.gmra.mxu2 %vm446_vm1, %v440_v20 }
  0x24   : > { %746 = vmatpush.msrb.mxu2 %v721_v41 }
  0x26   : > { %747 = vmatpush.msrb.mxu2 %v720_v44  ;;  %v832_v44 = vld [vmem:[%s1664_s7 + $0x78] sm:$0xff] }
  0x27   : > { %1107 = vmatmul.msk.f32.gmra.mxu1 %vm446_vm1, %v436_v8  ;;  %837 = vmatpush.msrb.mxu3 %v832_v44 }
  0x28   : > { %1103 = vmatmul.msk.f32.gmra.mxu0 %vm446_vm1, %v432_v9  ;;  %748 = vmatpush.msrb.mxu2 %v719_v45 }
  0x2a   : > { %749 = vmatpush.msrb.mxu2 %v718_v46 }
  0x2b   : > { %1112 = vmatmul.msk.f32.gmra.mxu2 %vm446_vm1, %v441_v22 }
  0x2c   : > { %750 = vmatpush.msrb.mxu2 %v717_v47  ;;  %v831_v47 = vld [vmem:[%s1664_s7 + $0x70] sm:$0xff] }
  0x2d   : > { %838 = vmatpush.msrb.mxu3 %v831_v47 }
  0x2e   : > { %751 = vmatpush.msrb.mxu2 %v716_v50  ;;  %v829_v50 = vld [vmem:[%s1664_s7 + $0x60] sm:$0xff] }
  0x2f   : > { %1108 = vmatmul.msk.f32.gmra.mxu1 %vm446_vm1, %v437_v10 }
  0x33   : > { %1113 = vmatmul.msk.f32.gmra.mxu2 %vm446_vm1, %v442_v25 }
  0x37   : > { %1117 = vmatmul.msk.f32.vlgmr.msrb.gmra.mxu1 %vm446_vm1, %v412_v11 }
  0x3f   : > { %1118 = vmatmul.msk.f32.gmra.mxu1 %vm446_vm1, %v413_v12 }
  0x47   : > { %1119 = vmatmul.msk.f32.gmra.mxu1 %vm446_vm1, %v414_v13 }
  0x4f   : > { %1120 = vmatmul.msk.f32.gmra.mxu1 %vm446_vm1, %v415_v14 }
  0x57   : > { %1121 = vmatmul.msk.f32.gmra.mxu1 %vm446_vm1, %v416_v15 }
  0x5f   : > { %1122 = vmatmul.msk.f32.gmra.mxu1 %vm446_vm1, %v417_v17 }
  0x67   : > { %1123 = vmatmul.msk.f32.gmra.mxu1 %vm446_vm1, %v418_v19 }
  0x6f   : > { %1124 = vmatmul.msk.f32.gmra.mxu1 %vm446_vm1, %v419_v21 }
  0x77   : > { %1125 = vmatmul.msk.f32.gmra.mxu1 %vm446_vm1, %v420_v23 }
  0x7f   : > { %1126 = vmatmul.msk.f32.gmra.mxu1 %vm446_vm1, %v421_v27 }
  0x87   : > { %1127 = vmatmul.msk.f32.gmra.mxu1 %vm446_vm1, %v422_v32 }
  0x8c   : > { %v528_v37 = vpop.f32.mrf.mxu1 }
  0x8d   : > { %v516_v55 = vpop.f32.mrf.mxu0 }
  0x8f   : > { %1128 = vmatmul.msk.f32.gmra.mxu1 %vm446_vm1, %v423_v38 }
  0x94   : > { %v531_v42 = vpop.f32.mrf.mxu1 }
  0x95   : > { %v519_v59 = vpop.f32.mrf.mxu0 }
  0x96   : > { %v543_v27 = vpop.f32.mrf.mxu2 }
  0x97   : > { %1129 = vmatmul.msk.f32.gmra.mxu1 %vm446_vm1, %v424_v43 }
  0x9c   : > { %v534_v48 = vpop.f32.mrf.mxu1 }
  0x9d   : > { %v522_v1 = vpop.f32.mrf.mxu0 }
  0x9e   : > { %v546_v33 = vpop.f32.mrf.mxu2 }
  0x9f   : > { %1130 = vmatmul.msk.f32.gmra.mxu1 %vm446_vm1, %v425_v49  ;;  %v830_v49 = vld [vmem:[%s1664_s7 + $0x68] sm:$0xff] }
  0xa0   : > { %839 = vmatpush.msrb.mxu3 %v830_v49 }
  0xa2   : > { %840 = vmatpush.msrb.mxu3 %v829_v50 }
  0xa4   : > { %v537_v51 = vpop.f32.mrf.mxu1 }
  0xa5   : > { %v525_v6 = vpop.f32.mrf.mxu0 }
  0xa6   : > { %v549_v39 = vpop.f32.mrf.mxu2 }
  0xa7   : > { %1131 = vmatmul.msk.f32.gmra.mxu1 %vm446_vm1, %v426_v52 }
  0xac   : > { %v540_v53 = vpop.f32.mrf.mxu1 }
  0xaf   : > { %1132 = vmatmul.msk.f32.gmra.mxu1 %vm446_vm1, %v427_v54 }
  0xb4   : > { %v632_v57 = vpop.f32.mrf.mxu1 }
  0xb5   : > { %v633_v58 = vadd.f32 %v632_v57, %v516_v55  ;;  %v827_v57 = vld [vmem:[%s1664_s7 + $0x50] sm:$0xff] }
  0xb7   : > { %v684_v60 = vadd.f32 %v1457_v56, %v633_v58  ;;  %v826_v58 = vld [vmem:[%s1664_s7 + $0x48] sm:$0xff] }
  0xb9   : > { %1150 = vtanh.f32 %v684_v60 }
  0xbc   : > { %v635_v61 = vpop.f32.mrf.mxu1 }
  0xbd   : > { %v636_v62 = vadd.f32 %v635_v61, %v519_v59  ;;  %v825_v59 = vld [vmem:[%s1664_s7 + $0x40] sm:$0xff]  ;;  %v824_v61 = vld [vmem:[%s1664_s7 + $0x38] sm:$0xff] }
  0xbf   : > { %v1151_v63 = vpop.eup %1150  ;;  %v685_v0 = vadd.f32 %v1457_v56, %v636_v62 }
  0xc0   : > { %752 = vmatmul.f32.vlgmr.msrb.gmra.mxu2 %v1151_v63 }
  0xc1   : > { %1152 = vtanh.f32 %v685_v0  ;;  %v823_v0 = vld [vmem:[%s1664_s7 + $0x30] sm:$0xff] }
  0xc4   : > { %v638_v2 = vpop.f32.mrf.mxu1 }
  0xc5   : > { %v639_v3 = vadd.f32 %v638_v2, %v522_v1 }
  0xc7   : > { %v1153_v4 = vpop.eup %1152  ;;  %v686_v5 = vadd.f32 %v1457_v56, %v639_v3  ;;  %v822_v3 = vld [vmem:[%s1664_s7 + $0x28] sm:$0xff] }
  0xc8   : > { %755 = vmatmul.f32.gmra.mxu2 %v1153_v4  ;;  %v558_v4 = vpop.f32.mrf.mxu3 }
  0xc9   : > { %1154 = vtanh.f32 %v686_v5  ;;  %v821_v5 = vld [vmem:[%s1664_s7 + $0x20] sm:$0xff] }
  0xcc   : > { %v641_v7 = vpop.f32.mrf.mxu1 }
  0xcd   : > { %v642_v8 = vadd.f32 %v641_v7, %v525_v6 }
  0xcf   : > { %v1155_v9 = vpop.eup %1154  ;;  %v687_v10 = vadd.f32 %v1457_v56, %v642_v8  ;;  %v820_v8 = vld [vmem:[%s1664_s7 + $0x18] sm:$0xff] }
  0xd0   : > { %758 = vmatmul.f32.gmra.mxu2 %v1155_v9  ;;  %v819_v9 = vld [vmem:[%s1664_s7 + $0x10] sm:$0xff] }
  0xd1   : > { %1156 = vtanh.f32 %v687_v10 }
  0xd4   : > { %v644_v11 = vpop.f32.mrf.mxu1 }
  0xd5   : > { %v645_v12 = vadd.f32 %v644_v11, %v528_v37 }
  0xd7   : > { %v1157_v13 = vpop.eup %1156  ;;  %v688_v14 = vadd.f32 %v1457_v56, %v645_v12  ;;  %v818_v12 = vld [vmem:[%s1664_s7 + $0x8] sm:$0xff] }
  0xd8   : > { %761 = vmatmul.f32.gmra.mxu2 %v1157_v13  ;;  %v561_v13 = vpop.f32.mrf.mxu3 }
  0xd9   : > { %1158 = vtanh.f32 %v688_v14  ;;  %v817_v14 = vld [vmem:[%s1664_s7] sm:$0xff] }
  0xdc   : > { %v647_v15 = vpop.f32.mrf.mxu1 }
  0xdd   : > { %v648_v16 = vadd.f32 %v647_v15, %v531_v42 }
  0xdf   : > { %v1159_v17 = vpop.eup %1158  ;;  %v689_v18 = vadd.f32 %v1457_v56, %v648_v16 }
  0xe0   : > { %764 = vmatmul.f32.gmra.mxu2 %v1159_v17 }
  0xe1   : > { %1160 = vtanh.f32 %v689_v18 }
  0xe4   : > { %v650_v19 = vpop.f32.mrf.mxu1 }
  0xe5   : > { %v651_v20 = vadd.f32 %v650_v19, %v534_v48  ;;  %v552_v48 = vpop.f32.mrf.mxu2 }
  0xe7   : > { %v1161_v21 = vpop.eup %1160  ;;  %v690_v22 = vadd.f32 %v1457_v56, %v651_v20  ;;  %v1526_v20 = vld [vmem:[%s1663_s6] ss:$0 sm:$0xff] }
  0xe8   : > { %767 = vmatmul.f32.gmra.mxu2 %v1161_v21 }
  0xe9   : > { %1162 = vtanh.f32 %v690_v22 }
  0xec   : > { %v653_v23 = vpop.f32.mrf.mxu1 }
  0xed   : > { %v654_v24 = vadd.f32 %v653_v23, %v537_v51  ;;  %v828_v51 = vld [vmem:[%s1664_s7 + $0x58] sm:$0xff]  ;;  %v555_v60 = vpop.f32.mrf.mxu2 }
  0xee   : > { %841 = vmatpush.msrb.mxu3 %v828_v51 }
  0xef   : > { %v1163_v25 = vpop.eup %1162  ;;  %v691_v26 = vadd.f32 %v1457_v56, %v654_v24 }
  0xf0   : > { %770 = vmatmul.f32.gmra.mxu2 %v1163_v25  ;;  %842 = vmatpush.msrb.mxu3 %v827_v57  ;;  %v932_v57 = vld [vmem:[%s1666_s9 + $0x70] sm:$0xff] }
  0xf1   : > { %1164 = vtanh.f32 %v691_v26 }
  0xf2   : > { %843 = vmatpush.msrb.mxu3 %v826_v58  ;;  %v931_v58 = vld [vmem:[%s1666_s9 + $0x68] sm:$0xff] }
  0xf4   : > { %v656_v28 = vpop.f32.mrf.mxu1  ;;  %844 = vmatpush.msrb.mxu3 %v825_v59  ;;  %v930_v59 = vld [vmem:[%s1666_s9 + $0x60] sm:$0xff] }
  0xf5   : > { %v657_v29 = vadd.f32 %v656_v28, %v540_v53 }
  0xf6   : > { %845 = vmatpush.msrb.mxu3 %v824_v61  ;;  %v928_v61 = vld [vmem:[%s1666_s9 + $0x50] sm:$0xff] }
  0xf7   : > { %v1165_v30 = vpop.eup %1164  ;;  %v692_v31 = vadd.f32 %v1457_v56, %v657_v29 }
  0xf8   : > { %773 = vmatmul.f32.gmra.mxu2 %v1165_v30  ;;  %846 = vmatpush.msrb.mxu3 %v823_v0 }
  0xf9   : > { %1166 = vtanh.f32 %v692_v31 }
  0xfa   : > { %847 = vmatpush.msrb.mxu3 %v822_v3  ;;  %v925_v3 = vld [vmem:[%s1666_s9 + $0x38] sm:$0xff] }
  0xfc   : > { %v659_v32 = vpop.f32.mrf.mxu1  ;;  %848 = vmatpush.msrb.mxu3 %v821_v5 }
  0xfd   : > { %v660_v34 = vadd.f32 %v659_v32, %v543_v27 }
  0xfe   : > { %849 = vmatpush.msrb.mxu3 %v820_v8  ;;  %v923_v8 = vld [vmem:[%s1666_s9 + $0x28] sm:$0xff] }
  0xff   : > { %v1167_v35 = vpop.eup %1166  ;;  %v693_v36 = vadd.f32 %v1457_v56, %v660_v34 }
 0x100   : > { %776 = vmatmul.f32.gmra.mxu2 %v1167_v35  ;;  %850 = vmatpush.msrb.mxu3 %v819_v9  ;;  %v922_v9 = vld [vmem:[%s1666_s9 + $0x20] sm:$0xff] }
 0x101   : > { %1168 = vtanh.f32 %v693_v36 }
 0x102   : > { %851 = vmatpush.msrb.mxu3 %v818_v12  ;;  %v920_v12 = vld [vmem:[%s1666_s9 + $0x10] sm:$0xff] }
 0x104   : > { %v662_v37 = vpop.f32.mrf.mxu1  ;;  %852 = vmatpush.msrb.mxu3 %v817_v14 }
 0x105   : > { %v663_v38 = vadd.f32 %v662_v37, %v546_v33 }
 0x107   : > { %v1169_v40 = vpop.eup %1168  ;;  %v694_v41 = vadd.f32 %v1457_v56, %v663_v38 }
 0x108   : > { %779 = vmatmul.f32.gmra.mxu2 %v1169_v40 }
 0x109   : > { %1170 = vtanh.f32 %v694_v41 }
 0x10c   : > { %v665_v42 = vpop.f32.mrf.mxu1 }
 0x10d   : > { %v666_v43 = vadd.f32 %v665_v42, %v549_v39 }
 0x10f   : > { %v1171_v45 = vpop.eup %1170  ;;  %v695_v46 = vadd.f32 %v1457_v56, %v666_v43 }
 0x110   : > { %782 = vmatmul.f32.gmra.mxu2 %v1171_v45 }
 0x111   : > { %1172 = vtanh.f32 %v695_v46 }
 0x114   : > { %v668_v52 = vpop.f32.mrf.mxu1 }
 0x115   : > { %v669_v53 = vadd.f32 %v668_v52, %v552_v48  ;;  %v933_v52 = vld [vmem:[%s1666_s9 + $0x78] sm:$0xff] }
 0x116   : > { %938 = vmatpush.msrb.mxu0 %v933_v52 }
 0x117   : > { %v1173_v54 = vpop.eup %1172  ;;  %v696_v55 = vadd.f32 %v1457_v56, %v669_v53 }
 0x118   : > { %785 = vmatmul.f32.gmra.mxu2 %v1173_v54  ;;  %939 = vmatpush.msrb.mxu0 %v932_v57 }
 0x119   : > { %1174 = vtanh.f32 %v696_v55 }
 0x11a   : > { %940 = vmatpush.msrb.mxu0 %v931_v58 }
 0x11c   : > { %v671_v62 = vpop.f32.mrf.mxu1  ;;  %941 = vmatpush.msrb.mxu0 %v930_v59 }
 0x11d   : > { %v672_v63 = vadd.f32 %v671_v62, %v555_v60  ;;  %v929_v60 = vld [vmem:[%s1666_s9 + $0x58] sm:$0xff] }
 0x11e   : > { %942 = vmatpush.msrb.mxu0 %v929_v60 }
 0x11f   : > { %v1175_v1 = vpop.eup %1174  ;;  %v697_v2 = vadd.f32 %v1457_v56, %v672_v63 }
 0x120   : > { %788 = vmatmul.f32.gmra.mxu2 %v1175_v1  ;;  %943 = vmatpush.msrb.mxu0 %v928_v61  ;;  %v927_v1 = vld [vmem:[%s1666_s9 + $0x48] sm:$0xff] }
 0x121   : > { %1176 = vtanh.f32 %v697_v2  ;;  %v926_v2 = vld [vmem:[%s1666_s9 + $0x40] sm:$0xff] }
 0x122   : > { %944 = vmatpush.msrb.mxu0 %v927_v1 }
 0x124   : > { %v674_v6 = vpop.f32.mrf.mxu1  ;;  %945 = vmatpush.msrb.mxu0 %v926_v2 }
 0x125   : > { %v675_v7 = vadd.f32 %v674_v6, %v558_v4  ;;  %v924_v4 = vld [vmem:[%s1666_s9 + $0x30] sm:$0xff] }
 0x126   : > { %946 = vmatpush.msrb.mxu0 %v925_v3 }
 0x127   : > { %v1177_v10 = vpop.eup %1176  ;;  %v698_v11 = vadd.f32 %v1457_v56, %v675_v7 }
 0x128   : > { %791 = vmatmul.f32.gmra.mxu2 %v1177_v10  ;;  %947 = vmatpush.msrb.mxu0 %v924_v4  ;;  %v921_v10 = vld [vmem:[%s1666_s9 + $0x18] sm:$0xff] }
 0x129   : > { %1178 = vtanh.f32 %v698_v11 }
 0x12a   : > { %948 = vmatpush.msrb.mxu0 %v923_v8 }
 0x12c   : > { %v677_v15 = vpop.f32.mrf.mxu1  ;;  %949 = vmatpush.msrb.mxu0 %v922_v9 }
 0x12d   : > { %v678_v16 = vadd.f32 %v677_v15, %v561_v13  ;;  %v919_v15 = vld [vmem:[%s1666_s9 + $0x8] sm:$0xff] }
 0x12e   : > { %950 = vmatpush.msrb.mxu0 %v921_v10 }
 0x12f   : > { %v1179_v17 = vpop.eup %1178  ;;  %v699_v18 = vadd.f32 %v1457_v56, %v678_v16  ;;  %v918_v16 = vld [vmem:[%s1666_s9] sm:$0xff] }
 0x130   : > { %794 = vmatmul.f32.gmra.mxu2 %v1179_v17  ;;  %951 = vmatpush.msrb.mxu0 %v920_v12 }
 0x131   : > { %1180 = vtanh.f32 %v699_v18 }
 0x132   : > { %952 = vmatpush.msrb.mxu0 %v919_v15 }
 0x134   : > { %953 = vmatpush.msrb.mxu0 %v918_v16 }
 0x137   : > { %v1181_v19 = vpop.eup %1180 }
 0x138   : > { %797 = vmatmul.f32.gmra.mxu2 %v1181_v19 }
 0x143   : > { %v753_v21 = vpop.f32.mrf.mxu2 }
 0x144   : > { %v754_v22 = vadd.f32 %v1526_v20, %v753_v21 }
 0x146   : > { %1182 = vtanh.f32 %v754_v22  ;;  %v1595_v22 = vld [vmem:[%s1665_s8] ss:$0 sm:$0xff] }
 0x14b   : > { %v756_v23 = vpop.f32.mrf.mxu2 }
 0x14c   : > { %v1183_v24 = vpop.eup %1182  ;;  %v757_v25 = vadd.f32 %v1526_v20, %v756_v23 }
 0x14d   : > { %853 = vmatmul.f32.vlgmr.msrb.gmra.mxu3 %v1183_v24 }
 0x14e   : > { %1184 = vtanh.f32 %v757_v25 }
 0x153   : > { %v759_v56 = vpop.f32.mrf.mxu2 }
 0x154   : > { %v1185_v26 = vpop.eup %1184  ;;  %v760_v27 = vadd.f32 %v1526_v20, %v759_v56 }
 0x155   : > { %856 = vmatmul.f32.gmra.mxu3 %v1185_v26 }
 0x156   : > { %1186 = vtanh.f32 %v760_v27 }
 0x15b   : > { %v762_v28 = vpop.f32.mrf.mxu2 }
 0x15c   : > { %v1187_v29 = vpop.eup %1186  ;;  %v763_v30 = vadd.f32 %v1526_v20, %v762_v28 }
 0x15d   : > { %859 = vmatmul.f32.gmra.mxu3 %v1187_v29 }
 0x15e   : > { %1188 = vtanh.f32 %v763_v30 }
 0x163   : > { %v765_v31 = vpop.f32.mrf.mxu2 }
 0x164   : > { %v1189_v32 = vpop.eup %1188  ;;  %v766_v33 = vadd.f32 %v1526_v20, %v765_v31 }
 0x165   : > { %862 = vmatmul.f32.gmra.mxu3 %v1189_v32 }
 0x166   : > { %1190 = vtanh.f32 %v766_v33 }
 0x16b   : > { %v768_v34 = vpop.f32.mrf.mxu2 }
 0x16c   : > { %v1191_v35 = vpop.eup %1190  ;;  %v769_v36 = vadd.f32 %v1526_v20, %v768_v34 }
 0x16d   : > { %865 = vmatmul.f32.gmra.mxu3 %v1191_v35 }
 0x16e   : > { %1192 = vtanh.f32 %v769_v36 }
 0x173   : > { %v771_v37 = vpop.f32.mrf.mxu2 }
 0x174   : > { %v1193_v38 = vpop.eup %1192  ;;  %v772_v39 = vadd.f32 %v1526_v20, %v771_v37 }
 0x175   : > { %868 = vmatmul.f32.gmra.mxu3 %v1193_v38 }
 0x176   : > { %1194 = vtanh.f32 %v772_v39 }
 0x17b   : > { %v774_v40 = vpop.f32.mrf.mxu2 }
 0x17c   : > { %v1195_v41 = vpop.eup %1194  ;;  %v775_v42 = vadd.f32 %v1526_v20, %v774_v40 }
 0x17d   : > { %871 = vmatmul.f32.gmra.mxu3 %v1195_v41 }
 0x17e   : > { %1196 = vtanh.f32 %v775_v42 }
 0x183   : > { %v777_v43 = vpop.f32.mrf.mxu2 }
 0x184   : > { %v1197_v44 = vpop.eup %1196  ;;  %v778_v45 = vadd.f32 %v1526_v20, %v777_v43 }
 0x185   : > { %874 = vmatmul.f32.gmra.mxu3 %v1197_v44 }
 0x186   : > { %1198 = vtanh.f32 %v778_v45 }
 0x18b   : > { %v780_v46 = vpop.f32.mrf.mxu2 }
 0x18c   : > { %v1199_v47 = vpop.eup %1198  ;;  %v781_v48 = vadd.f32 %v1526_v20, %v780_v46 }
 0x18d   : > { %877 = vmatmul.f32.gmra.mxu3 %v1199_v47 }
 0x18e   : > { %1200 = vtanh.f32 %v781_v48 }
 0x193   : > { %v783_v49 = vpop.f32.mrf.mxu2 }
 0x194   : > { %v1201_v50 = vpop.eup %1200  ;;  %v784_v51 = vadd.f32 %v1526_v20, %v783_v49 }
 0x195   : > { %880 = vmatmul.f32.gmra.mxu3 %v1201_v50 }
 0x196   : > { %1202 = vtanh.f32 %v784_v51 }
 0x19b   : > { %v786_v53 = vpop.f32.mrf.mxu2 }
 0x19c   : > { %v1203_v54 = vpop.eup %1202  ;;  %v787_v55 = vadd.f32 %v1526_v20, %v786_v53 }
 0x19d   : > { %883 = vmatmul.f32.gmra.mxu3 %v1203_v54 }
 0x19e   : > { %1204 = vtanh.f32 %v787_v55 }
 0x1a3   : > { %v789_v62 = vpop.f32.mrf.mxu2 }
 0x1a4   : > { %v1205_v63 = vpop.eup %1204  ;;  %v790_v0 = vadd.f32 %v1526_v20, %v789_v62 }
 0x1a5   : > { %886 = vmatmul.f32.gmra.mxu3 %v1205_v63 }
 0x1a6   : > { %1206 = vtanh.f32 %v790_v0 }
 0x1ab   : > { %v792_v5 = vpop.f32.mrf.mxu2 }
 0x1ac   : > { %v1207_v6 = vpop.eup %1206  ;;  %v793_v7 = vadd.f32 %v1526_v20, %v792_v5 }
 0x1ad   : > { %889 = vmatmul.f32.gmra.mxu3 %v1207_v6  ;;  %v1149_v6 = vld [vmem:[%s1667_s10] ss:$0 sm:$0xff] }
 0x1ae   : > { %1208 = vtanh.f32 %v793_v7 }
 0x1b3   : > { %v795_v11 = vpop.f32.mrf.mxu2 }
 0x1b4   : > { %v1209_v13 = vpop.eup %1208  ;;  %v796_v14 = vadd.f32 %v1526_v20, %v795_v11 }
 0x1b5   : > { %892 = vmatmul.f32.gmra.mxu3 %v1209_v13 }
 0x1b6   : > { %1210 = vtanh.f32 %v796_v14 }
 0x1bb   : > { %v798_v17 = vpop.f32.mrf.mxu2 }
 0x1bc   : > { %v1211_v18 = vpop.eup %1210  ;;  %v799_v19 = vadd.f32 %v1526_v20, %v798_v17 }
 0x1bd   : > { %895 = vmatmul.f32.gmra.mxu3 %v1211_v18 }
 0x1be   : > { %1212 = vtanh.f32 %v799_v19 }
 0x1c4   : > { %v1213_v21 = vpop.eup %1212 }
 0x1c5   : > { %898 = vmatmul.f32.gmra.mxu3 %v1213_v21 }
 0x1d0   : > { %v854_v23 = vpop.f32.mrf.mxu3 }
 0x1d1   : > { %v855_v24 = vadd.f32 %v1595_v22, %v854_v23 }
 0x1d3   : > { %1214 = vtanh.f32 %v855_v24 }
 0x1d8   : > { %v857_v25 = vpop.f32.mrf.mxu3 }
 0x1d9   : > { %v1215_v56 = vpop.eup %1214  ;;  %v858_v26 = vadd.f32 %v1595_v22, %v857_v25 }
 0x1da   : > { %954 = vmatmul.f32.vlgmr.msrb.gmra.mxu0 %v1215_v56 }
 0x1db   : > { %1216 = vtanh.f32 %v858_v26 }
 0x1e0   : > { %v860_v20 = vpop.f32.mrf.mxu3 }
 0x1e1   : > { %v1217_v27 = vpop.eup %1216  ;;  %v861_v28 = vadd.f32 %v1595_v22, %v860_v20 }
 0x1e2   : > { %957 = vmatmul.f32.gmra.mxu0 %v1217_v27 }
 0x1e3   : > { %1218 = vtanh.f32 %v861_v28 }
 0x1e8   : > { %v863_v29 = vpop.f32.mrf.mxu3 }
 0x1e9   : > { %v1219_v30 = vpop.eup %1218  ;;  %v864_v31 = vadd.f32 %v1595_v22, %v863_v29 }
 0x1ea   : > { %960 = vmatmul.f32.gmra.mxu0 %v1219_v30 }
 0x1eb   : > { %1220 = vtanh.f32 %v864_v31 }
 0x1f0   : > { %v866_v32 = vpop.f32.mrf.mxu3 }
 0x1f1   : > { %v1221_v33 = vpop.eup %1220  ;;  %v867_v34 = vadd.f32 %v1595_v22, %v866_v32 }
 0x1f2   : > { %963 = vmatmul.f32.gmra.mxu0 %v1221_v33 }
 0x1f3   : > { %1222 = vtanh.f32 %v867_v34 }
 0x1f8   : > { %v869_v35 = vpop.f32.mrf.mxu3 }
 0x1f9   : > { %v1223_v36 = vpop.eup %1222  ;;  %v870_v37 = vadd.f32 %v1595_v22, %v869_v35 }
 0x1fa   : > { %966 = vmatmul.f32.gmra.mxu0 %v1223_v36 }
 0x1fb   : > { %1224 = vtanh.f32 %v870_v37 }
 0x200   : > { %v872_v38 = vpop.f32.mrf.mxu3 }
 0x201   : > { %v1225_v39 = vpop.eup %1224  ;;  %v873_v40 = vadd.f32 %v1595_v22, %v872_v38 }
 0x202   : > { %969 = vmatmul.f32.gmra.mxu0 %v1225_v39 }
 0x203   : > { %1226 = vtanh.f32 %v873_v40 }
 0x208   : > { %v875_v41 = vpop.f32.mrf.mxu3 }
 0x209   : > { %v1227_v42 = vpop.eup %1226  ;;  %v876_v43 = vadd.f32 %v1595_v22, %v875_v41 }
 0x20a   : > { %972 = vmatmul.f32.gmra.mxu0 %v1227_v42 }
 0x20b   : > { %1228 = vtanh.f32 %v876_v43 }
 0x210   : > { %v878_v44 = vpop.f32.mrf.mxu3 }
 0x211   : > { %v1229_v45 = vpop.eup %1228  ;;  %v879_v46 = vadd.f32 %v1595_v22, %v878_v44 }
 0x212   : > { %975 = vmatmul.f32.gmra.mxu0 %v1229_v45 }
 0x213   : > { %1230 = vtanh.f32 %v879_v46 }
 0x218   : > { %v881_v47 = vpop.f32.mrf.mxu3 }
 0x219   : > { %v1231_v48 = vpop.eup %1230  ;;  %v882_v49 = vadd.f32 %v1595_v22, %v881_v47 }
 0x21a   : > { %978 = vmatmul.f32.gmra.mxu0 %v1231_v48 }
 0x21b   : > { %1232 = vtanh.f32 %v882_v49 }
 0x220   : > { %v884_v50 = vpop.f32.mrf.mxu3 }
 0x221   : > { %v1233_v51 = vpop.eup %1232  ;;  %v885_v52 = vadd.f32 %v1595_v22, %v884_v50 }
 0x222   : > { %981 = vmatmul.f32.gmra.mxu0 %v1233_v51 }
 0x223   : > { %1234 = vtanh.f32 %v885_v52 }
 0x228   : > { %v887_v53 = vpop.f32.mrf.mxu3 }
 0x229   : > { %v1235_v54 = vpop.eup %1234  ;;  %v888_v55 = vadd.f32 %v1595_v22, %v887_v53 }
 0x22a   : > { %984 = vmatmul.f32.gmra.mxu0 %v1235_v54 }
 0x22b   : > { %1236 = vtanh.f32 %v888_v55 }
 0x230   : > { %v890_v57 = vpop.f32.mrf.mxu3 }
 0x231   : > { %v1237_v58 = vpop.eup %1236  ;;  %v891_v59 = vadd.f32 %v1595_v22, %v890_v57 }
 0x232   : > { %987 = vmatmul.f32.gmra.mxu0 %v1237_v58 }
 0x233   : > { %1238 = vtanh.f32 %v891_v59 }
 0x238   : > { %v893_v60 = vpop.f32.mrf.mxu3 }
 0x239   : > { %v1239_v61 = vpop.eup %1238  ;;  %v894_v62 = vadd.f32 %v1595_v22, %v893_v60 }
 0x23a   : > { %990 = vmatmul.f32.gmra.mxu0 %v1239_v61 }
 0x23b   : > { %1240 = vtanh.f32 %v894_v62 }
 0x240   : > { %v896_v63 = vpop.f32.mrf.mxu3 }
 0x241   : > { %v1241_v0 = vpop.eup %1240  ;;  %v897_v1 = vadd.f32 %v1595_v22, %v896_v63 }
 0x242   : > { %993 = vmatmul.f32.gmra.mxu0 %v1241_v0 }
 0x243   : > { %1242 = vtanh.f32 %v897_v1 }
 0x248   : > { %v899_v2 = vpop.f32.mrf.mxu3 }
 0x249   : > { %v1243_v3 = vpop.eup %1242  ;;  %v900_v4 = vadd.f32 %v1595_v22, %v899_v2 }
 0x24a   : > { %996 = vmatmul.f32.gmra.mxu0 %v1243_v3 }
 0x24b   : > { %1244 = vtanh.f32 %v900_v4 }
 0x251   : > { %v1245_v5 = vpop.eup %1244 }
 0x252   : > { %999 = vmatmul.f32.gmra.mxu0 %v1245_v5 }
 0x257   : > { %v955_v7 = vpop.f32.mrf.mxu0 }
 0x258   : > { %v956_v8 = vadd.f32 %v1149_v6, %v955_v7 }
 0x25a   : > { %1004 = vst.msk [vmem:[%s1620_s18] sm:$0xff] %vm1003_vm2, %v956_v8 }
 0x25f   : > { %v958_v9 = vpop.f32.mrf.mxu0 }
 0x260   : > { %v959_v10 = vadd.f32 %v1149_v6, %v958_v9 }
 0x262   : > { %1005 = vst.msk [vmem:[%s1620_s18 + $0x8] sm:$0xff] %vm1003_vm2, %v959_v10 }
 0x267   : > { %v961_v11 = vpop.f32.mrf.mxu0 }
 0x268   : > { %v962_v12 = vadd.f32 %v1149_v6, %v961_v11 }
 0x26a   : > { %1006 = vst.msk [vmem:[%s1620_s18 + $0x10] sm:$0xff] %vm1003_vm2, %v962_v12 }
 0x26f   : > { %v964_v13 = vpop.f32.mrf.mxu0 }
 0x270   : > { %v965_v14 = vadd.f32 %v1149_v6, %v964_v13 }
 0x272   : > { %1007 = vst.msk [vmem:[%s1620_s18 + $0x18] sm:$0xff] %vm1003_vm2, %v965_v14 }
 0x277   : > { %v967_v15 = vpop.f32.mrf.mxu0 }
 0x278   : > { %v968_v16 = vadd.f32 %v1149_v6, %v967_v15 }
 0x27a   : > { %1008 = vst.msk [vmem:[%s1620_s18 + $0x20] sm:$0xff] %vm1003_vm2, %v968_v16 }
 0x27f   : > { %v970_v17 = vpop.f32.mrf.mxu0 }
 0x280   : > { %v971_v18 = vadd.f32 %v1149_v6, %v970_v17 }
 0x282   : > { %1009 = vst.msk [vmem:[%s1620_s18 + $0x28] sm:$0xff] %vm1003_vm2, %v971_v18 }
 0x287   : > { %v973_v19 = vpop.f32.mrf.mxu0 }
 0x288   : > { %v974_v21 = vadd.f32 %v1149_v6, %v973_v19 }
 0x28a   : > { %1010 = vst.msk [vmem:[%s1620_s18 + $0x30] sm:$0xff] %vm1003_vm2, %v974_v21 }
 0x28f   : > { %v976_v22 = vpop.f32.mrf.mxu0 }
 0x290   : > { %v977_v23 = vadd.f32 %v1149_v6, %v976_v22 }
 0x292   : > { %1011 = vst.msk [vmem:[%s1620_s18 + $0x38] sm:$0xff] %vm1003_vm2, %v977_v23 }
 0x297   : > { %v979_v24 = vpop.f32.mrf.mxu0 }
 0x298   : > { %v980_v25 = vadd.f32 %v1149_v6, %v979_v24 }
 0x29a   : > { %1012 = vst.msk [vmem:[%s1620_s18 + $0x40] sm:$0xff] %vm1003_vm2, %v980_v25 }
 0x29f   : > { %v982_v56 = vpop.f32.mrf.mxu0 }
 0x2a0   : > { %v983_v26 = vadd.f32 %v1149_v6, %v982_v56 }
 0x2a2   : > { %1013 = vst.msk [vmem:[%s1620_s18 + $0x48] sm:$0xff] %vm1003_vm2, %v983_v26 }
 0x2a7   : > { %v985_v20 = vpop.f32.mrf.mxu0 }
 0x2a8   : > { %v986_v27 = vadd.f32 %v1149_v6, %v985_v20 }
 0x2aa   : > { %1014 = vst.msk [vmem:[%s1620_s18 + $0x50] sm:$0xff] %vm1003_vm2, %v986_v27 }
 0x2af   : > { %v988_v28 = vpop.f32.mrf.mxu0 }
 0x2b0   : > { %v989_v29 = vadd.f32 %v1149_v6, %v988_v28 }
 0x2b2   : > { %1015 = vst.msk [vmem:[%s1620_s18 + $0x58] sm:$0xff] %vm1003_vm2, %v989_v29 }
 0x2b7   : > { %v991_v30 = vpop.f32.mrf.mxu0 }
 0x2b8   : > { %v992_v31 = vadd.f32 %v1149_v6, %v991_v30 }
 0x2ba   : > { %1016 = vst.msk [vmem:[%s1620_s18 + $0x60] sm:$0xff] %vm1003_vm2, %v992_v31 }
 0x2bf   : > { %v994_v32 = vpop.f32.mrf.mxu0 }
 0x2c0   : > { %v995_v33 = vadd.f32 %v1149_v6, %v994_v32 }
 0x2c2   : > { %1017 = vst.msk [vmem:[%s1620_s18 + $0x68] sm:$0xff] %vm1003_vm2, %v995_v33 }
 0x2c7   : > { %v997_v34 = vpop.f32.mrf.mxu0 }
 0x2c8   : > { %v998_v35 = vadd.f32 %v1149_v6, %v997_v34 }
 0x2ca   : > { %1018 = vst.msk [vmem:[%s1620_s18 + $0x70] sm:$0xff] %vm1003_vm2, %v998_v35 }
 0x2cf   : > { %v1000_v36 = vpop.f32.mrf.mxu0 }
 0x2d0   : > { %v1001_v37 = vadd.f32 %v1149_v6, %v1000_v36 }
 0x2d2   : > { %1019 = vst.msk [vmem:[%s1620_s18 + $0x78] sm:$0xff] %vm1003_vm2, %v1001_v37 }
 0x2d3 PF: > { %s21_s17 = sadd.s32 1, %s1252_s17  }
 0x2d4   : > { %p18_p4 = scmp.ge.s32.totalorder %s21_s17, 4  }
 0x2d6   :  { %20 = sbr.rel (!%p18_p4) target bundleno = 1 (0x1), region = 97 }

</bundles_post_ra>
